<compile_context>
chip_gen: v5e
topology: v5e:2x2
jax: 0.10.0
libtpu: 0.0.40
codegen_flags: <defaults>
</compile_context>

<pallas_src>
import jax
import jax.numpy as jnp
from jax import lax
from jax.experimental import pallas as pl
from jax.experimental.pallas import tpu as pltpu


def _round_up(x: int, m: int) -> int:
    return (x + m - 1) // m * m


def _make_attn_kernel(nout_p: int, s_valid: int, s_pad: int):
    """Kernel closure. nout_p is the lane-padded head width."""

    def attn_kernel(y_ref, w_ref, o_ref):
        Bb, S, nin = y_ref.shape             # static block shape (nin unpadded)

        # ---- fused QKV projection: (Bb*S, nin) x (nin, 3*nout_p)
        #      bf16 MXU operands, f32 accumulation.
        y2d = y_ref[...].reshape(Bb * S, nin).astype(jnp.bfloat16)
        qkv = jnp.dot(y2d, w_ref[...], preferred_element_type=jnp.float32)
        qkv = qkv.reshape(Bb, S, 3 * nout_p)

        # lane-aligned static slices; 1/sqrt(nout) is already folded into Wq.
        q = qkv[:, :, 0 * nout_p:1 * nout_p]
        k = qkv[:, :, 1 * nout_p:2 * nout_p]
        v = qkv[:, :, 2 * nout_p:3 * nout_p]

        # ---- attention scores: batched contraction over the feature dim
        #      (no explicit transpose of k); bf16 operands, f32 accumulate.
        s = lax.dot_general(
            q.astype(jnp.bfloat16), k.astype(jnp.bfloat16),
            dimension_numbers=(((2,), (2,)), ((0,), (0,))),
            preferred_element_type=jnp.float32)        # (Bb, S, S) f32

        # additive key-padding bias: one (1,1,S) row broadcast into the add
        # (no S^2-sized int32 mask tensor). Only emitted if S was padded.
        if s_pad > s_valid:
            key_idx = lax.broadcasted_iota(jnp.int32, (1, 1, s_pad), 2)
            bias = jnp.where(key_idx < s_valid, 0.0, -1e30).astype(jnp.float32)
            s = s + bias

        # ---- numerically stable softmax over the key axis (all f32)
        s = s - jnp.max(s, axis=-1, keepdims=True)
        p = jnp.exp(s)
        denom = jnp.sum(p, axis=-1, keepdims=True)
        p = p * pl.reciprocal(denom, approx=True)      # EUP slot, ~free

        # ---- weighted sum of values: bf16 operands, f32 accumulate
        out = lax.dot_general(
            p.astype(jnp.bfloat16), v.astype(jnp.bfloat16),
            dimension_numbers=(((2,), (1,)), ((0,), (0,))),
            preferred_element_type=jnp.float32)        # (Bb, S, nout_p)

        o_ref[...] = out.astype(o_ref.dtype)

    return attn_kernel


def single_self_attention(y, wq, wk, wv):
    """
    y  : (B, S, nin)  float32
    wq, wk, wv : (nout, nin)  (PyTorch Linear weight layout)
    returns (B, S, nout)
    """
    B, S, nin = y.shape
    nout = wq.shape[0]
    dtype = y.dtype

    # Only pad the N (output/lane) dims and the sequence sublane dim.
    # The nin contraction dim is deliberately left unpadded (full-extent block).
    nout_p = _round_up(nout, 128)
    S_p = _round_up(S, 8)

    # ---- batch-block sizing, adapted to this chip's VMEM capacity
    try:
        vmem_cap = int(getattr(pltpu.get_tpu_info(), "vmem_capacity_bytes",
                               64 << 20))
    except Exception:  # pragma: no cover - conservative fallback
        vmem_cap = 64 << 20
    rows_target = 512 if vmem_cap >= (96 << 20) else 256   # v5e/v6e vs v7x

    Bb = max(1, rows_target // S_p)
    # live score region ~= 3 copies of the (Bb,S_p,S_p) f32 tile (s, exp, p);
    # cap it at ~9 MiB total so it fits v7x's 64 MiB / v5e's scoped budget.
    per_score_tile = S_p * S_p * 4
    Bb = max(1, min(Bb, (9 << 20) // (3 * per_score_tile)))
    Bb = min(Bb, B)
    # v7x has 2 TensorCores: guarantee >= 2 "parallel" grid steps when B >= 2.
    if B >= 2 and (B + Bb - 1) // Bb < 2:
        Bb = max(1, (B + 1) // 2)
    B_p = _round_up(B, Bb)

    # ---- fused, lane-padded, pre-transposed weights in bf16: (nin, 3*nout_p)
    #      1/sqrt(nout) folded into the Wq columns.
    scale = 1.0 / float(nout) ** 0.5

    def _col_pad(w_t):  # (nin, nout) -> (nin, nout_p), zero padded cols
        return jnp.pad(w_t, ((0, 0), (0, nout_p - nout)))

    w_qkv = jnp.concatenate(
        [_col_pad((wq * scale).T.astype(jnp.float32)),
         _col_pad(wk.T.astype(jnp.float32)),
         _col_pad(wv.T.astype(jnp.float32))],
        axis=1).astype(jnp.bfloat16)                  # (nin, 3*nout_p) bf16

    # pad only batch / sequence when required (no feature-dim padding)
    if (B_p, S_p) != (B, S):
        y_in = jnp.pad(y, ((0, B_p - B), (0, S_p - S), (0, 0)))
    else:
        y_in = y

    # ---- explicit VMEM budget (scoped limit) from the computed footprint
    bytes_y_blk = Bb * S_p * nin * 4            # f32 input block
    bytes_w = nin * 3 * nout_p * 2              # bf16 fused weight
    bytes_out = Bb * S_p * nout_p * 4           # f32 output block
    bytes_qkv = Bb * S_p * 3 * nout_p * (4 + 2)  # f32 qkv + bf16 q/k/v copies
    bytes_score = Bb * S_p * S_p * 4
    vmem_est = (2 * bytes_y_blk + 2 * bytes_w + 2 * bytes_out
                + bytes_qkv + 3 * bytes_score)
    vmem_limit = int(1.5 * vmem_est) + (4 << 20)
    vmem_limit = max(32 << 20, min(vmem_limit, 48 << 20))  # ok on v5e..v7x

    kernel = _make_attn_kernel(nout_p, S, S_p)

    out_p = pl.pallas_call(
        kernel,
        out_shape=jax.ShapeDtypeStruct((B_p, S_p, nout_p), dtype),
        grid_spec=pltpu.PrefetchScalarGridSpec(
            num_scalar_prefetch=0,
            grid=(B_p // Bb,),
            in_specs=[
                pl.BlockSpec((Bb, S_p, nin), lambda b: (b, 0, 0)),
                pl.BlockSpec((nin, 3 * nout_p), lambda b: (0, 0)),
            ],
            out_specs=pl.BlockSpec((Bb, S_p, nout_p), lambda b: (b, 0, 0)),
        ),
        compiler_params=pltpu.CompilerParams(
            dimension_semantics=("parallel",),
            vmem_limit_bytes=vmem_limit,
        ),
    )(y_in, w_qkv)

    return out_p[:B, :S, :nout]


def single_self_attention_ref(y, wq, wk, wv):
    """Pure-JAX f32 reference (mirrors the PyTorch forward)."""
    nout = wq.shape[0]
    q = y @ wq.T
    k = y @ wk.T
    v = y @ wv.T
    att = q @ jnp.swapaxes(k, -2, -1)
    att = jax.nn.softmax(att / (nout ** 0.5), axis=-1)
    return att @ v


if __name__ == "__main__":
    # small shapes consistent with the module's forward: (batch, seq, features)
    B, S = 2, 8
    nin, nout = 32, 32

    key = jax.random.PRNGKey(0)
    k_y, k_q, k_k, k_v = jax.random.split(key, 4)

    y = jax.random.normal(k_y, (B, S, nin), dtype=jnp.float32)

    # weight init mimicking torch.nn.Linear's uniform(-1/sqrt(nin), 1/sqrt(nin))
    bound = 1.0 / (nin ** 0.5)
    wq = jax.random.uniform(k_q, (nout, nin), jnp.float32, -bound, bound)
    wk = jax.random.uniform(k_k, (nout, nin), jnp.float32, -bound, bound)
    wv = jax.random.uniform(k_v, (nout, nin), jnp.float32, -bound, bound)

    out = single_self_attention(y, wq, wk, wv)
    out = jax.block_until_ready(out)

    ref = single_self_attention_ref(y, wq, wk, wv)
    assert out.shape == (B, S, nout)
    # tolerance accounts for bf16 MXU operands (f32 accumulate) and the EUP
    # approximate reciprocal in the softmax denominator (~1e-3 rel each).
    assert jnp.allclose(out, ref, atol=3e-2, rtol=3e-2), "mismatch vs reference"

    print("KERNEL_OK")
</pallas_src>

<mosaic_0001>
module attributes {stable_mosaic.version = 11 : i64} {
  func.func @attn_kernel(%arg0: i32, %arg1: memref<1x8x32xf32, #tpu.memory_space<vmem>>, %arg2: memref<32x384xbf16, #tpu.memory_space<vmem>>, %arg3: memref<1x8x128xf32, #tpu.memory_space<vmem>>) attributes {dimension_semantics = [#tpu.dimension_semantics<parallel>], iteration_bounds = array<i64: 2>, scalar_prefetch = 0 : i64, scratch_operands = 0 : i64, tpu.core_type = #tpu.core_type<tc>, window_params = [{transform_indices = @transform_0, window_bounds = array<i64: 1, 8, 32>}, {pipeline_mode = #tpu.pipeline_mode<synchronous>, transform_indices = @transform_1, window_bounds = array<i64: 32, 384>}, {transform_indices = @transform_2, window_bounds = array<i64: 1, 8, 128>}]} {
    %c0 = arith.constant 0 : index
    %c0_0 = arith.constant 0 : index
    %c0_1 = arith.constant 0 : index
    %0 = vector.load %arg1[%c0, %c0_0, %c0_1] : memref<1x8x32xf32, #tpu.memory_space<vmem>>, vector<1x8x32xf32>
    %1 = vector.shape_cast %0 : vector<1x8x32xf32> to vector<8x32xf32>
    %2 = arith.truncf %1 : vector<8x32xf32> to vector<8x32xbf16>
    %c0_2 = arith.constant 0 : index
    %c0_3 = arith.constant 0 : index
    %3 = vector.load %arg2[%c0_2, %c0_3] : memref<32x384xbf16, #tpu.memory_space<vmem>>, vector<32x384xbf16>
    %cst = arith.constant dense<0.000000e+00> : vector<8x384xf32>
    %4 = tpu.matmul %2, %3, %cst {dimension_numbers = #tpu.dot_dimension_numbers<[1], [0], [0], [1], [0, 0, 1, 1], [], []>} : vector<8x32xbf16>, vector<32x384xbf16>, vector<8x384xf32> -> vector<8x384xf32>
    %5 = vector.shape_cast %4 : vector<8x384xf32> to vector<1x8x384xf32>
    %6 = vector.extract_strided_slice %5 {offsets = [0, 0, 0], sizes = [1, 8, 128], strides = [1, 1, 1]} : vector<1x8x384xf32> to vector<1x8x128xf32>
    %7 = vector.extract_strided_slice %5 {offsets = [0, 0, 128], sizes = [1, 8, 128], strides = [1, 1, 1]} : vector<1x8x384xf32> to vector<1x8x128xf32>
    %8 = vector.extract_strided_slice %5 {offsets = [0, 0, 256], sizes = [1, 8, 128], strides = [1, 1, 1]} : vector<1x8x384xf32> to vector<1x8x128xf32>
    %9 = arith.truncf %6 : vector<1x8x128xf32> to vector<1x8x128xbf16>
    %10 = arith.truncf %7 : vector<1x8x128xf32> to vector<1x8x128xbf16>
    %cst_4 = arith.constant dense<0.000000e+00> : vector<1x8x8xf32>
    %11 = tpu.matmul %9, %10, %cst_4 {dimension_numbers = #tpu.dot_dimension_numbers<[2], [2], [1], [1], [0, 0, 0, 1, 1, 1], [0], [0]>} : vector<1x8x128xbf16>, vector<1x8x128xbf16>, vector<1x8x8xf32> -> vector<1x8x8xf32>
    %cst_5 = arith.constant dense<0xFF800000> : vector<1x8xf32>
    %12 = vector.multi_reduction <maximumf>, %11, %cst_5 [2] : vector<1x8x8xf32> to vector<1x8xf32>
    %13 = vector.shape_cast %12 : vector<1x8xf32> to vector<1x8x1xf32>
    %14 = vector.broadcast %13 : vector<1x8x1xf32> to vector<1x8x8xf32>
    %15 = arith.subf %11, %14 : vector<1x8x8xf32>
    %16 = math.exp %15 : vector<1x8x8xf32>
    %cst_6 = arith.constant dense<0.000000e+00> : vector<1x8xf32>
    %17 = vector.multi_reduction <add>, %16, %cst_6 [2] : vector<1x8x8xf32> to vector<1x8xf32>
    %18 = vector.shape_cast %17 : vector<1x8xf32> to vector<1x8x1xf32>
    %19 = tpu.reciprocal %18 {approx = true} : vector<1x8x1xf32> -> vector<1x8x1xf32>
    %20 = vector.broadcast %19 : vector<1x8x1xf32> to vector<1x8x8xf32>
    %21 = arith.mulf %16, %20 : vector<1x8x8xf32>
    %22 = arith.truncf %21 : vector<1x8x8xf32> to vector<1x8x8xbf16>
    %23 = arith.truncf %8 : vector<1x8x128xf32> to vector<1x8x128xbf16>
    %cst_7 = arith.constant dense<0.000000e+00> : vector<1x8x128xf32>
    %24 = tpu.matmul %22, %23, %cst_7 {dimension_numbers = #tpu.dot_dimension_numbers<[2], [1], [1], [2], [0, 0, 0, 1, 1, 2], [0], [0]>} : vector<1x8x8xbf16>, vector<1x8x128xbf16>, vector<1x8x128xf32> -> vector<1x8x128xf32>
    %c0_8 = arith.constant 0 : index
    %c0_9 = arith.constant 0 : index
    %c0_10 = arith.constant 0 : index
    %25 = vector.load %arg3[%c0_8, %c0_9, %c0_10] : memref<1x8x128xf32, #tpu.memory_space<vmem>>, vector<1x8x128xf32>
    tpu.vector_store %arg3[%c0_8, %c0_9, %c0_10], %24 {strides = array<i32>} : memref<1x8x128xf32, #tpu.memory_space<vmem>>, vector<1x8x128xf32>,
    return
  }
  func.func @transform_0(%arg0: i32) -> (i32, i32, i32) {
    %c0_i32 = arith.constant 0 : i32
    %c0_i32_0 = arith.constant 0 : i32
    %c0_i32_1 = arith.constant 0 : i32
    return %arg0, %c0_i32, %c0_i32_0 : i32, i32, i32
  }
  func.func @transform_1(%arg0: i32) -> (i32, i32) {
    %c0_i32 = arith.constant 0 : i32
    %c0_i32_0 = arith.constant 0 : i32
    %c0_i32_1 = arith.constant 0 : i32
    return %c0_i32, %c0_i32_0 : i32, i32
  }
  func.func @transform_2(%arg0: i32) -> (i32, i32, i32) {
    %c0_i32 = arith.constant 0 : i32
    %c0_i32_0 = arith.constant 0 : i32
    %c0_i32_1 = arith.constant 0 : i32
    return %arg0, %c0_i32, %c0_i32_0 : i32, i32, i32
  }
}

</mosaic_0001>

<bundles_post_ra>
// kernel: tpu_custom_call.1
= control target key start
LH: loop header
LB: loop body
LE: loop exit
PB: predicated region body
PF: predicated region fallthrough
CT: control target
= control target key end

     0   :  { %7 = vsyncpa [#allocation3], 0  ;;  %s817_s0 = inlined_call_operand.hbm [shape: f32[2,8,32], index: 0, kind: input, shape index: {}]   ;;  %s818_s1 = inlined_call_operand.hbm [shape: bf16[32,384], index: 1, kind: input, shape index: {}]   ;;  %s819_s2 = inlined_call_operand.hbm [shape: f32[2,8,128], index: 2, kind: output, shape index: {}]  }
   0x1   :  { %9 = vsyncpa [#allocation3 + $0x1], 0 }
   0x2   :  { %10 = vsyncpa [#allocation6], 0 }
   0x3   :  { %11 = vsyncpa [#allocation4], 0 }
   0x4   :  { %13 = vsyncpa [#allocation4 + $0x1], 0  ;;  %s671_s9 = smov 0   ;;  %s673_s10 = smov 0  }
   0x5   :  { %s675_s11 = smov 0   ;;  %s677_s12 = smov 0  }
   0x6 LB: > { %s108_s15 = sshll.u32 %s818_s1, 4  ;;  %s695_s16 = sadd.s32 4294967295, %s651_s12   ;;  %s651_s12 = sphi %s677_s12, %s829_s12   ;;  %s647_s11 = sphi %s675_s11, %s828_s11   ;;  %s643_s10 = sphi %s673_s10, %s827_s10   ;;  %s639_s9 = sphi %s671_s9, %s826_s9   ;;  %s109_s15 = int_to_ptr.hbm [resolvable:$true] %s108_s15 }
   0x7   : > { %p411_p0 = scmp.ge.s32.totalorder %s651_s12, 1  ;;  %p40_p1 = scmp.eq.s32.totalorder %s695_s16, 0 }
   0x8   : > { %p97_p2 = scmp.lt.s32.totalorder %s651_s12, 3  ;;  %s653_s18 = smov [#allocation5]  }
   0x9   : > { %s110_s19 = sshll.u32 %s653_s18, 4  ;;  %s654_s20 = smov 192   ;;  %s111_s19 = int_to_ptr.vmem [resolvable:$true] %s110_s19 }
   0xa   : > { %p700_p3 = pnand %p411_p0, %p97_p2  ;;  %s655_s21 = smov 12  }
   0xb   : > { %s410_s22 = sadd.s32 4294967294, %s651_s12   ;;  %s711_s23 = sadd.s32 1, %s651_s12  }
   0xc   : > { %p466_p4 = pneg %p700_p3  ;;  %s26_s24 = sadd.s32 1, %s647_s11 }
   0xd   : > { %s23_s25 = ssub.s32 %s651_s12, %s711_s23  ;;  %p33_p7 = scmp.ne.s32.totalorder %s647_s11, %s643_s10 }
   0xe   : > { %p467_p6 = pnand %p466_p4, %p40_p1  ;;  %p24_p8 = scmp.eq.s32.totalorder %s23_s25, 0 }
   0xf   : > { %p34_p9 = scmp.eq.s32.totalorder %s651_s12, 0  ;;  %p39_p10 = scmp.ne.s32.totalorder %s643_s10, %s639_s9 }
  0x10   : > { %469 = dma.hbm_to_vmem [thread:$0]  (!%p467_p6), %s109_s15, 768, %s111_s19, [#allocation6], %s654_s20, %s654_s20, %s655_s21  }
  0x11   : > { %p84_p11 = scmp.eq.s32.totalorder %s695_s16, 1  ;;  %p727_p12 = por %p40_p1, %p39_p10 }
  0x12   : > { %s723_s26 = scalar_select %p24_p8, %s647_s11, %s26_s24  }
  0x13   : > { %p731_p13 = por %p84_p11, %p33_p7  ;;  %p90_p0 = scmp.eq.s32.totalorder %s410_s22, 1 }
  0x14   : > { %p35_p2 = por %p34_p9, %p33_p7  ;;  %s124_s29 = sand.u32 1, %s647_s11  }
  0x15   : > { %p736_p4 = por %p90_p0, %p39_p10  ;;  %p479_p6 = scmp.lt.s32.totalorder %s651_s12, 2 }
  0x16   : > { %s414_s3 = sshll.u32 %s124_s29, 3  ;;  %s415_s4 = sshll.u32 %s651_s12, 3 }
  0x17   : > { %s132_s7 = scalar_lea.hbm %s817_s0, %s415_s4  ;;  %s128_s13 = scalar_lea.vmem [#allocation2], %s414_s3 }
  0x18   : > { %s134_s8 = sshll.u32 %s132_s7, 4  ;;  %s136_s14 = sshll.u32 %s128_s13, 4  ;;  %s135_s8 = int_to_ptr.hbm [resolvable:$true] %s134_s8  ;;  %s137_s14 = int_to_ptr.vmem [resolvable:$true] %s136_s14 }
  0x19   : > { %p745_p8 = pnand %p479_p6, %p35_p2  ;;  %s125_s18 = scalar_lea.sflag [#allocation3], %s124_s29 }
  0x1a   : > { %s551_s19 = sshra.s32 %s135_s8, 4  ;;  %s558_s24 = scalar_lea.hbm %s817_s0, 16  ;;  %s552_s19 = int_to_ptr.hbm [resolvable:$true] %s551_s19 }
  0x1b   : > { %s553_s20 = scalar_lea.hbm %s552_s19, 8  ;;  %p555_p9 = pneg %p745_p8 }
  0x1c   : > { %p554_p7 = scmp.ne.s32.totalorder %s552_s19, %s553_s20  ;;  %p559_p0 = scmp.lt.s32.totalorder %s552_s19, %s817_s0 }
  0x1d   : > { %p560_p2 = scmp.lt.s32.totalorder %s558_s24, %s553_s20 }
  0x1e   : > { %p556_p10 = pnand %p555_p9, %p554_p7 }
  0x1f   : > { %p561_p6 = por %p560_p2, %p559_p0 }
  0x20   : > { %p557_p11 = pneg %p556_p10 }
  0x22   : > { %p562_p5 = pnand %p561_p6, %p557_p11 }
  0x24   : > { %565 = shalt.err (!%p562_p5)
}
  0x25   : > { %473 = dma.hbm_to_vmem [thread:$0]  (!%p745_p8), %s135_s8, 128, %s137_s14, %s125_s18  }
  0x26   : > { %145 = sbr.rel (%p700_p3) target bundleno = 714 (0x2ca), region = 28  ;;  %s762_s29 = sand.u32 (!%p700_p3), 1, %s643_s10  }
  0x27   : > { %s417_s4 = sshll.u32 (!%p700_p3), %s762_s29, 3  ;;  %s148_s5 = scalar_lea.sflag (!%p700_p3), [#allocation3], %s762_s29 }
  0x28   : > { %s151_s6 = scalar_lea.vmem (!%p700_p3), [#allocation2], %s417_s4 }
  0x2b   : > { %626 = dma.done.wait (%p727_p12), %s148_s5, 128  }
  0x2c   : > { %628 = vsyncadd (%p727_p12), %s148_s5, 4294967168 }
  0x2d   : > { %630 = dma.done.wait (%p40_p1), [#allocation6], 768  }
  0x2e   : > { %632 = vsyncadd (%p40_p1), [#allocation6], 4294966528  ;;  %v434_v0 = vld [vmem:[#allocation5 + $0x18] sm:$0xf]  ;;  %v456_v1 = vld [vmem:[#allocation5 + $0x20] sm:$0xf0] }
  0x2f   : > { %v455_v2 = vld [vmem:[#allocation5 + $0x1c] sm:$0xf]  ;;  %v435_v3 = vor.u32 %v456_v1, %v434_v0  ;;  %v436_v4 = vld [vmem:[#allocation5 + $0x24] sm:$0xf0]  ;;  %v422_v5 = vld [vmem:[#allocation5] sm:$0xf] }
  0x30   : > { %v453_v6 = vld [vmem:[#allocation5 + $0x8] sm:$0xf0]  ;;  %v439_v7 = vor.u32 %v455_v2, %v436_v4  ;;  %v452_v8 = vld [vmem:[#allocation5 + $0x4] sm:$0xf]  ;;  %v424_v9 = vld [vmem:[#allocation5 + $0xc] sm:$0xf0] }
  0x31   : > { %231 = vmatpush.bf16.msra.mxu0 %v435_v3  ;;  %v423_v10 = vor.u32 %v453_v6, %v422_v5  ;;  %v179_v11 = vld [vmem:[%s151_s6] sm:$0xff]  ;;  %v427_v12 = vor.u32 %v452_v8, %v424_v9  ;;  %vm221_vm0 = vcmask 261120   ;;  %v442_v20 = vld [vmem:[#allocation5 + $0x20] sm:$0xf]  ;;  %v457_v21 = vld [vmem:[#allocation5 + $0x28] sm:$0xf0] }
  0x32   : > { %244 = vmatpush.bf16.msra.mxu1 %v439_v7  ;;  %v180_v13 = vpack.c.bf16 %v179_v11, %v179_v11  ;;  %v430_v22 = vld [vmem:[#allocation5 + $0x8] sm:$0xf]  ;;  %v443_v23 = vor.u32 %v457_v21, %v442_v20  ;;  %v454_v24 = vld [vmem:[#allocation5 + $0x10] sm:$0xf0]  ;;  %vm279_vm1 = vcmask 64512   ;;  %vm296_vm2 = vcmask 1043456  }
  0x33   : > { %v431_v25 = vor.u32 %v454_v24, %v430_v22  ;;  %s449_s17 = sshll.u32 %s695_s16, 3  ;;  %s177_s13 = scalar_lea.vmem [#allocation7], %s417_s4 }
  0x34   : > { %257 = vmatpush.bf16.msra.mxu2 %v443_v23  ;;  %s325_s8 = scalar_lea.hbm %s819_s2, %s449_s17  ;;  %s327_s14 = sshll.u32 %s177_s13, 4  ;;  %s328_s14 = int_to_ptr.vmem [resolvable:$true] %s327_s14 }
  0x35   : > { %232 = vmatpush.bf16.msra.mxu0 %v423_v10  ;;  %s329_s15 = sshll.u32 %s325_s8, 4  ;;  %s315_s18 = scalar_lea.sflag [#allocation4], %s762_s29  ;;  %s330_s15 = int_to_ptr.hbm [resolvable:$true] %s329_s15 }
  0x36   : > { %245 = vmatpush.bf16.msra.mxu1 %v427_v12  ;;  %s595_s19 = sshra.s32 %s330_s15, 4  ;;  %s601_s22 = scalar_lea.hbm %s819_s2, 16  ;;  %s596_s19 = int_to_ptr.hbm [resolvable:$true] %s595_s19 }
  0x37   : > { %s597_s20 = scalar_lea.hbm %s596_s19, 8  ;;  %p602_p12 = scmp.lt.s32.totalorder %s596_s19, %s819_s2 }
  0x38   : > { %444 = vmatmul.msk.bf16.vlgmr.msra.gmra.mxu0 %vm221_vm0, %v180_v13  ;;  %258 = vmatpush.bf16.msra.mxu2 %v431_v25  ;;  %p598_p1 = scmp.ne.s32.totalorder %s596_s19, %s597_s20  ;;  %p603_p8 = scmp.lt.s32.totalorder %s601_s22, %s597_s20 }
  0x39   : > { %445 = vmatmul.msk.bf16.vlgmr.msra.gmra.mxu1 %vm221_vm0, %v180_v13 }
  0x3a   : > { %p599_p3 = pnand %p598_p1, %p731_p13  ;;  %p604_p7 = por %p603_p8, %p602_p12 }
  0x3b   : > { %446 = vmatmul.msk.bf16.vlgmr.msra.gmra.mxu2 %vm221_vm0, %v180_v13 }
  0x3c   : > { %p600_p5 = pneg %p599_p3 }
  0x3e   : > { %p605_p9 = pnand %p604_p7, %p600_p5 }
  0xb5   : > { %v234_v14 = vpop.f32.mrf.mxu0 }
  0xb6   : > { %v247_v15 = vpop.f32.mrf.mxu1  ;;  %v264_v17 = vpack.c.bf16 %v234_v14, %v234_v14 }
  0xb7   : > { %v265_v16 = vpack.c.bf16 %v247_v15, %v247_v15 }
  0xb9   : > { %273 = vmatpush.bf16.xpose.msra.mxu3 %v265_v16 }
  0xbd   : > { %v236_v18 = vpop.f32.mrf.mxu0 }
  0xbe   : > { %v249_v19 = vpop.f32.mrf.mxu1  ;;  %v260_v30 = vpop.f32.mrf.mxu2 }
  0xbf   : > { %v292_v32 = vpack.c.bf16 %v260_v30, %v260_v30 }
  0xc0   : > { %274 = vmatmul.bf16.vlgmr.msra.gmra.mxu3 %v264_v17 }
  0xc1   : > { %v298_v34 = vsel %vm296_vm2, %v292_v32, 0 }
  0xc2   : > { %307 = vmatpush.bf16.msrb.mxu0 %v298_v34 }
  0xc6   : > { %v262_v35 = vpop.f32.mrf.mxu2 }
 0x143   : > { %v275_v26 = vpop.f32.mrf.mxu3 }
 0x144   : > { %v280_v27 = vsel %vm279_vm1, %v275_v26, -inf }
 0x145   : > { %281 = vmax.xlane.f32.xlu0 %v280_v27 }
 0x14b   : > { %v277_v28 = vpop.f32.mrf.mxu3 }
 0x1b8   : > { %v282_v29 = vpop.xlane.xlu0 %281 }
 0x1b9   : > { %v283_v31 = vsub.f32 %v275_v26, %v282_v29 }
 0x1bb   : > { %v284_v33 = vmul.f32 1.442695, %v283_v31 }
 0x1bd   : > { %517 = vpow2.f32 %v284_v33 }
 0x1c3   : > { %v518_v36 = vpop.eup %517 }
 0x1c4   : > { %v286_v37 = vsel %vm279_vm1, %v518_v36, 0.0 }
 0x1c5   : > { %287 = vadd.xlane.f32.xlu0 %v286_v37 }
 0x238   : > { %v288_v38 = vpop.xlane.xlu0 %287 }
 0x239   : > { %519 = vrcp.f32 %v288_v38 }
 0x23f   : > { %v520_v39 = vpop.eup %519 }
 0x240   : > { %v290_v40 = vmul.f32 %v520_v39, %v518_v36 }
 0x242   : > { %v291_v41 = vpack.c.bf16 %v290_v40, %v290_v40 }
 0x244   : > { %447 = vmatmul.msk.bf16.vlgmr.msrb.gmra.mxu0 %vm279_vm1, %v291_v41 }
 0x2c1   : > { %v309_v42 = vpop.f32.mrf.mxu0 }
 0x2c2   : > { %313 = vst [vmem:[%s177_s13] sm:$0xff] %v309_v42 }
 0x2c3   : > { %608 = shalt.err (!%p605_p9)
}
 0x2c4   : > { %464 = dma.vmem_to_hbm [thread:$0]  (%p731_p13), %s328_s14, 128, %s330_s15, %s315_s18  }
 0x2c9   : > { %v311_v43 = vpop.f32.mrf.mxu0 }
 0x2ca PF: > { %s341_s3 = sand.u32 1, %s639_s9   ;;  %p825_p10 = scmp.ge.s32.totalorder %s651_s12, 2 }
 0x2cb   : > { %s342_s29 = scalar_lea.sflag [#allocation4], %s341_s3 }
 0x2cc   : > { %p475_p11 = pnand %p825_p10, %p736_p4 }
 0x2ce   : > { %p476_p0 = pneg %p475_p11 }
 0x2d0   : > { %634 = dma.done.wait (%p476_p0), %s342_s29, 128  }
 0x2d1   : > { %636 = vsyncadd (%p476_p0), %s342_s29, 4294967168  ;;  %p16_p2 = scmp.ge.s32.totalorder %s711_s23, 4   ;;  %s826_s9 = smov %s643_s10 }
 0x2d2   : > { %s827_s10 = smov %s647_s11  ;;  %s828_s11 = smov %s723_s26 }
 0x2d3   : > { %s829_s12 = smov %s711_s23  ;;  %18 = sbr.rel (!%p16_p2) target bundleno = 6 (0x6), region = 77 }
 0x2d8   :  { %348 = vsyncpa [#allocation3], 1 }
 0x2d9   :  { %350 = vsyncpa [#allocation3 + $0x1], 1 }
 0x2da   :  { %351 = vsyncpa [#allocation6], 1 }
 0x2db   :  { %352 = vsyncpa [#allocation4], 1 }
 0x2dc   :  { %354 = vsyncpa [#allocation4 + $0x1], 1 }

</bundles_post_ra>
